<compile_context>
chip_gen: v7x
topology: tpu7x:2x2x1
jax: 0.10.0
libtpu: 0.0.40
codegen_flags: <defaults>
</compile_context>

<pallas_src>
import functools

import jax
import jax.numpy as jnp
from jax.experimental import pallas as pl
from jax.experimental.pallas import tpu as pltpu

EPS = 1e-5
_LANE = 128
_S_TILE_MAX = 4096                        # max lanes per tile (multiple of 128)
_TARGET_BLOCK_BYTES = 4 * 1024 * 1024     # ~4 MiB per streamed block
_MAX_ROW_BLOCK = 512
_VMEM_LIMIT_BYTES = 32 * 1024 * 1024      # explicit scoped-VMEM budget (all gens)
_FUSED_BUDGET_BYTES = 20 * 1024 * 1024    # in+out double-buffered budget, fused IN


def _round_up(x, m):
    return (x + m - 1) // m * m


def _sublane_unit(dtype):
    itemsize = jnp.dtype(dtype).itemsize
    return {4: 8, 2: 16, 1: 32}.get(itemsize, 8)


def _clamp_rows(rb, G, sub):
    """Row-block size: multiple of sub, <= 512, >= 2 blocks when G allows it."""
    rb = max(sub, (rb // sub) * sub)
    rb = min(rb, _MAX_ROW_BLOCK)
    if G > sub:
        # guarantee >= 2 row blocks so both v7x TensorCores get work
        rb = min(rb, _round_up(pl.cdiv(G, 2), sub))
    rb = min(rb, _round_up(G, sub))
    return max(rb, sub)


def _pick_two_pass_tiles(G, S, dtype):
    sub = _sublane_unit(dtype)
    St = min(_S_TILE_MAX, _round_up(S, _LANE))
    rb = _TARGET_BLOCK_BYTES // (4 * St)
    return _clamp_rows(rb, G, sub), St


def _pick_fused_rows(G, Sblk, in_dtype, out_dtype):
    """Rows per fused block, or None if one row slab cannot fit the budget."""
    sub = _sublane_unit(in_dtype)
    bytes_per_row = Sblk * 2 * (jnp.dtype(in_dtype).itemsize +
                                jnp.dtype(out_dtype).itemsize)  # 2x: double buffer
    rb = _FUSED_BUDGET_BYTES // max(bytes_per_row, 1)
    if rb < sub:
        return None
    return _clamp_rows(rb, G, sub)


# --------------------------- Pallas kernels ---------------------------
def _stats_kernel(x_ref, sum_ref, sq_ref, *, S, St):
    # x_ref: (Rb, St).  sum/sq outputs: (Rb, 1), resident across the S axis
    # (output block index constant along axis 1 -> accumulator pattern).
    @pl.when(pl.program_id(1) == 0)
    def _():
        sum_ref[...] = jnp.zeros_like(sum_ref)
        sq_ref[...] = jnp.zeros_like(sq_ref)

    x = x_ref[...].astype(jnp.float32)
    if S % St != 0:
        # mask the ragged lane tail (garbage beyond column S)
        col = pl.program_id(1) * St + jax.lax.broadcasted_iota(jnp.int32, x.shape, 1)
        x = jnp.where(col < S, x, 0.0)
    sum_ref[...] += jnp.sum(x, axis=-1, keepdims=True)
    sq_ref[...] += jnp.sum(x * x, axis=-1, keepdims=True)


def _apply_kernel(x_ref, scale_ref, shift_ref, o_ref):
    # y = x * scale + shift  (normalization + affine folded into per-row scale/shift)
    x = x_ref[...].astype(jnp.float32)
    o_ref[...] = (x * scale_ref[...] + shift_ref[...]).astype(o_ref.dtype)


def _in_fused_kernel(x_ref, g_ref, b_ref, o_ref, *, S):
    # Fused InstanceNorm: the whole (padded) row lives in this block.
    x = x_ref[...].astype(jnp.float32)                     # (Rb, Sblk)
    if x.shape[-1] != S:
        col = jax.lax.broadcasted_iota(jnp.int32, x.shape, 1)
        xm = jnp.where(col < S, x, 0.0)
    else:
        xm = x
    s = jnp.sum(xm, axis=-1, keepdims=True)
    q = jnp.sum(xm * xm, axis=-1, keepdims=True)
    inv_s = 1.0 / S
    mean = s * inv_s
    var = jnp.maximum(q * inv_s - mean * mean, 0.0)        # biased variance, clamped
    scale = g_ref[...] * jax.lax.rsqrt(var + EPS)
    shift = b_ref[...] - mean * scale
    o_ref[...] = (x * scale + shift).astype(o_ref.dtype)   # tail stores auto-dropped


# --------------------------- pallas_call wrappers ---------------------------
def _compute_row_stats(x2d, Rb, St):
    G, S = x2d.shape
    grid = (pl.cdiv(G, Rb), pl.cdiv(S, St))
    kernel = functools.partial(_stats_kernel, S=S, St=St)
    return pl.pallas_call(
        kernel,
        out_shape=(jax.ShapeDtypeStruct((G, 1), jnp.float32),
                   jax.ShapeDtypeStruct((G, 1), jnp.float32)),
        grid=grid,
        in_specs=[pl.BlockSpec((Rb, St), lambda i, j: (i, j))],
        out_specs=(pl.BlockSpec((Rb, 1), lambda i, j: (i, 0)),
                   pl.BlockSpec((Rb, 1), lambda i, j: (i, 0))),
        compiler_params=pltpu.CompilerParams(
            dimension_semantics=("parallel", "arbitrary"),
            vmem_limit_bytes=_VMEM_LIMIT_BYTES),
    )(x2d)


def _apply_affine(x2d, scale, shift, Rb, St, out_dtype):
    G, S = x2d.shape
    grid = (pl.cdiv(G, Rb), pl.cdiv(S, St))
    return pl.pallas_call(
        _apply_kernel,
        out_shape=jax.ShapeDtypeStruct((G, S), out_dtype),
        grid=grid,
        in_specs=[pl.BlockSpec((Rb, St), lambda i, j: (i, j)),
                  pl.BlockSpec((Rb, 1), lambda i, j: (i, 0)),
                  pl.BlockSpec((Rb, 1), lambda i, j: (i, 0))],
        out_specs=pl.BlockSpec((Rb, St), lambda i, j: (i, j)),
        compiler_params=pltpu.CompilerParams(
            dimension_semantics=("parallel", "parallel"),
            vmem_limit_bytes=_VMEM_LIMIT_BYTES),
    )(x2d, scale, shift)


def _instance_norm_fused(x2d, g_rows, b_rows, Rb, Sblk, out_dtype):
    G, S = x2d.shape
    grid = (pl.cdiv(G, Rb),)
    kernel = functools.partial(_in_fused_kernel, S=S)
    return pl.pallas_call(
        kernel,
        out_shape=jax.ShapeDtypeStruct((G, S), out_dtype),
        grid=grid,
        in_specs=[pl.BlockSpec((Rb, Sblk), lambda i: (i, 0)),
                  pl.BlockSpec((Rb, 1), lambda i: (i, 0)),
                  pl.BlockSpec((Rb, 1), lambda i: (i, 0))],
        out_specs=pl.BlockSpec((Rb, Sblk), lambda i: (i, 0)),
        compiler_params=pltpu.CompilerParams(
            dimension_semantics=("parallel",),
            vmem_limit_bytes=_VMEM_LIMIT_BYTES),
    )(x2d, g_rows, b_rows)


# --------------------------- forward wrapper ---------------------------
@functools.partial(jax.jit, static_argnames=("norm_type", "format_type"))
def _norm_switch_forward(x, gamma, beta, *, norm_type, format_type):
    orig_shape = x.shape
    if format_type == "1D":
        N, C, S = x.shape
    else:
        N, C, H, W = x.shape
        S = H * W
    G = N * C
    x2d = x.reshape(G, S)                       # contiguous view: no transpose

    if norm_type == "IN":
        g_rows = jnp.tile(gamma, N).reshape(G, 1).astype(jnp.float32)
        b_rows = jnp.tile(beta, N).reshape(G, 1).astype(jnp.float32)
        Sblk = _round_up(S, _LANE)
        Rb = _pick_fused_rows(G, Sblk, x.dtype, x.dtype)
        if Rb is not None:
            # Fused single-pass: read x once, write y once.
            y = _instance_norm_fused(x2d, g_rows, b_rows, Rb, Sblk, x.dtype)
            return y.reshape(orig_shape)
        # Fallback (very long rows): two-pass with per-row stats.
        Rb, St = _pick_two_pass_tiles(G, S, x.dtype)
        s, q = _compute_row_stats(x2d, Rb, St)
        mean = s[:, 0] / S
        var = jnp.maximum(q[:, 0] / S - mean * mean, 0.0)
        scale = g_rows[:, 0] * jax.lax.rsqrt(var + EPS)
        shift = b_rows[:, 0] - mean * scale
        y = _apply_affine(x2d, scale.reshape(G, 1), shift.reshape(G, 1),
                          Rb, St, x.dtype)
        return y.reshape(orig_shape)

    # BN: stats must be combined across the batch -> two-pass
    # (per-row partials in pass 1, tiny O(N*C) combine in JAX, apply in pass 2).
    Rb, St = _pick_two_pass_tiles(G, S, x.dtype)
    s, q = _compute_row_stats(x2d, Rb, St)
    cnt = N * S
    sum_c = s[:, 0].reshape(N, C).sum(0)
    sq_c = q[:, 0].reshape(N, C).sum(0)
    mean_c = sum_c / cnt
    var_c = jnp.maximum(sq_c / cnt - mean_c * mean_c, 0.0)   # biased, clamped
    scale_c = gamma * jax.lax.rsqrt(var_c + EPS)
    shift_c = beta - mean_c * scale_c
    scale = jnp.tile(scale_c, N).reshape(G, 1).astype(jnp.float32)
    shift = jnp.tile(shift_c, N).reshape(G, 1).astype(jnp.float32)
    y = _apply_affine(x2d, scale, shift, Rb, St, x.dtype)
    return y.reshape(orig_shape)


class NormSwitch:
    """JAX/Pallas equivalent of the PyTorch NormSwitch module (forward only)."""

    def __init__(self, norm_type, format_type, feat_dim, key):
        assert norm_type in ("BN", "IN") and format_type in ("1D", "2D")
        self.norm_type = norm_type
        self.format_type = format_type
        self.feat_dim = feat_dim
        # Deterministic synthetic affine parameters (PyTorch default init is
        # gamma=1, beta=0; random values exercise the affine path).
        kg, kb = jax.random.split(key)
        self.gamma = jax.random.normal(kg, (feat_dim,), jnp.float32) * 0.1 + 1.0
        self.beta = jax.random.normal(kb, (feat_dim,), jnp.float32) * 0.1

    def __call__(self, x):
        return _norm_switch_forward(x, self.gamma, self.beta,
                                    norm_type=self.norm_type,
                                    format_type=self.format_type)


# ----------------------------- reference (plain JAX) -----------------------------
def _ref_norm(x, gamma, beta, norm_type, format_type):
    if norm_type == "BN":
        axes = (0, 2) if format_type == "1D" else (0, 2, 3)
    else:  # IN
        axes = (2,) if format_type == "1D" else (2, 3)
    mean = jnp.mean(x, axis=axes, keepdims=True)
    var = jnp.mean((x - mean) ** 2, axis=axes, keepdims=True)
    xhat = (x - mean) * jax.lax.rsqrt(var + EPS)
    bshape = (1, -1, 1) if format_type == "1D" else (1, -1, 1, 1)
    return xhat * gamma.reshape(bshape) + beta.reshape(bshape)


if __name__ == "__main__":
    key = jax.random.PRNGKey(0)
    k_data, k_mod = jax.random.split(key)

    # (format_type, shape): aligned + ragged spatial/row cases
    configs = [
        ("2D", (2, 4, 16, 16)),   # primary 2D case, S = 256 (aligned)
        ("1D", (2, 4, 250)),      # ragged S (not a multiple of 128)
        ("2D", (2, 3, 12, 12)),   # ragged rows (G = 6) and ragged S (144)
    ]

    ok = True
    for idx, (format_type, shape) in enumerate(configs):
        kx = jax.random.fold_in(k_data, idx)
        x = jax.random.normal(kx, shape, jnp.float32)
        C = shape[1]
        for norm_type in ("BN", "IN"):
            mod = NormSwitch(norm_type, format_type, C, k_mod)
            y = jax.block_until_ready(mod(x))
            y_ref = _ref_norm(x, mod.gamma, mod.beta, norm_type, format_type)
            if not jnp.allclose(y, y_ref, atol=1e-4, rtol=1e-4):
                ok = False

    if ok:
        print("KERNEL_OK")
    else:
        print("KERNEL_MISMATCH")
</pallas_src>

<mosaic_0001>
module attributes {stable_mosaic.version = 11 : i64} {
  func.func @_stats_kernel(%arg0: i32, %arg1: i32, %arg2: memref<8x256xf32, #tpu.memory_space<vmem>>, %arg3: memref<8x1xf32, #tpu.memory_space<vmem>>, %arg4: memref<8x1xf32, #tpu.memory_space<vmem>>) attributes {dimension_semantics = [#tpu.dimension_semantics<parallel>, #tpu.dimension_semantics<arbitrary>], iteration_bounds = array<i64: 1, 1>, scalar_prefetch = 0 : i64, scratch_operands = 0 : i64, tpu.core_type = #tpu.core_type<tc>, window_params = [{transform_indices = @transform_0, window_bounds = array<i64: 8, 256>}, {transform_indices = @transform_1, window_bounds = array<i64: 8, 1>}, {transform_indices = @transform_2, window_bounds = array<i64: 8, 1>}]} {
    %c0_i32 = arith.constant 0 : i32
    %0 = arith.cmpi eq, %arg1, %c0_i32 : i32
    %1 = arith.extui %0 : i1 to i32
    %c0_i32_0 = arith.constant 0 : i32
    %2 = arith.cmpi ne, %1, %c0_i32_0 : i32
    scf.if %2 {
      %cst_11 = arith.constant 0.000000e+00 : f32
      %15 = vector.broadcast %cst_11 : f32 to vector<8x1xf32>
      %c0_12 = arith.constant 0 : index
      %c0_13 = arith.constant 0 : index
      %16 = vector.load %arg3[%c0_12, %c0_13] : memref<8x1xf32, #tpu.memory_space<vmem>>, vector<8x1xf32>
      tpu.vector_store %arg3[%c0_12, %c0_13], %15 {strides = array<i32>} : memref<8x1xf32, #tpu.memory_space<vmem>>, vector<8x1xf32>,
      %cst_14 = arith.constant 0.000000e+00 : f32
      %17 = vector.broadcast %cst_14 : f32 to vector<8x1xf32>
      %c0_15 = arith.constant 0 : index
      %c0_16 = arith.constant 0 : index
      %18 = vector.load %arg4[%c0_15, %c0_16] : memref<8x1xf32, #tpu.memory_space<vmem>>, vector<8x1xf32>
      tpu.vector_store %arg4[%c0_15, %c0_16], %17 {strides = array<i32>} : memref<8x1xf32, #tpu.memory_space<vmem>>, vector<8x1xf32>,
    } else {
    }
    %c0 = arith.constant 0 : index
    %c0_1 = arith.constant 0 : index
    %3 = vector.load %arg2[%c0, %c0_1] : memref<8x256xf32, #tpu.memory_space<vmem>>, vector<8x256xf32>
    %c0_2 = arith.constant 0 : index
    %c0_3 = arith.constant 0 : index
    %4 = vector.load %arg3[%c0_2, %c0_3] : memref<8x1xf32, #tpu.memory_space<vmem>>, vector<8x1xf32>
    %cst = arith.constant dense<0.000000e+00> : vector<8xf32>
    %5 = vector.multi_reduction <add>, %3, %cst [1] : vector<8x256xf32> to vector<8xf32>
    %6 = vector.shape_cast %5 : vector<8xf32> to vector<8x1xf32>
    %7 = arith.addf %4, %6 : vector<8x1xf32>
    %c0_4 = arith.constant 0 : index
    %c0_5 = arith.constant 0 : index
    %8 = vector.load %arg3[%c0_4, %c0_5] : memref<8x1xf32, #tpu.memory_space<vmem>>, vector<8x1xf32>
    tpu.vector_store %arg3[%c0_4, %c0_5], %7 {strides = array<i32>} : memref<8x1xf32, #tpu.memory_space<vmem>>, vector<8x1xf32>,
    %c0_6 = arith.constant 0 : index
    %c0_7 = arith.constant 0 : index
    %9 = vector.load %arg4[%c0_6, %c0_7] : memref<8x1xf32, #tpu.memory_space<vmem>>, vector<8x1xf32>
    %10 = arith.mulf %3, %3 : vector<8x256xf32>
    %cst_8 = arith.constant dense<0.000000e+00> : vector<8xf32>
    %11 = vector.multi_reduction <add>, %10, %cst_8 [1] : vector<8x256xf32> to vector<8xf32>
    %12 = vector.shape_cast %11 : vector<8xf32> to vector<8x1xf32>
    %13 = arith.addf %9, %12 : vector<8x1xf32>
    %c0_9 = arith.constant 0 : index
    %c0_10 = arith.constant 0 : index
    %14 = vector.load %arg4[%c0_9, %c0_10] : memref<8x1xf32, #tpu.memory_space<vmem>>, vector<8x1xf32>
    tpu.vector_store %arg4[%c0_9, %c0_10], %13 {strides = array<i32>} : memref<8x1xf32, #tpu.memory_space<vmem>>, vector<8x1xf32>,
    return
  }
  func.func @transform_0(%arg0: i32, %arg1: i32) -> (i32, i32) {
    %c0_i32 = arith.constant 0 : i32
    return %arg0, %arg1 : i32, i32
  }
  func.func @transform_1(%arg0: i32, %arg1: i32) -> (i32, i32) {
    %c0_i32 = arith.constant 0 : i32
    %c0_i32_0 = arith.constant 0 : i32
    return %arg0, %c0_i32 : i32, i32
  }
  func.func @transform_2(%arg0: i32, %arg1: i32) -> (i32, i32) {
    %c0_i32 = arith.constant 0 : i32
    %c0_i32_0 = arith.constant 0 : i32
    return %arg0, %c0_i32 : i32, i32
  }
}

module attributes {stable_mosaic.version = 11 : i64} {
  func.func @_apply_kernel(%arg0: i32, %arg1: i32, %arg2: memref<8x256xf32, #tpu.memory_space<vmem>>, %arg3: memref<8x1xf32, #tpu.memory_space<vmem>>, %arg4: memref<8x1xf32, #tpu.memory_space<vmem>>, %arg5: memref<8x256xf32, #tpu.memory_space<vmem>>) attributes {dimension_semantics = [#tpu.dimension_semantics<parallel>, #tpu.dimension_semantics<parallel>], iteration_bounds = array<i64: 1, 1>, scalar_prefetch = 0 : i64, scratch_operands = 0 : i64, tpu.core_type = #tpu.core_type<tc>, window_params = [{transform_indices = @transform_0, window_bounds = array<i64: 8, 256>}, {transform_indices = @transform_1, window_bounds = array<i64: 8, 1>}, {transform_indices = @transform_2, window_bounds = array<i64: 8, 1>}, {transform_indices = @transform_3, window_bounds = array<i64: 8, 256>}]} {
    %c0 = arith.constant 0 : index
    %c0_0 = arith.constant 0 : index
    %0 = vector.load %arg2[%c0, %c0_0] : memref<8x256xf32, #tpu.memory_space<vmem>>, vector<8x256xf32>
    %c0_1 = arith.constant 0 : index
    %c0_2 = arith.constant 0 : index
    %1 = vector.load %arg3[%c0_1, %c0_2] : memref<8x1xf32, #tpu.memory_space<vmem>>, vector<8x1xf32>
    %2 = vector.broadcast %1 : vector<8x1xf32> to vector<8x256xf32>
    %3 = arith.mulf %0, %2 : vector<8x256xf32>
    %c0_3 = arith.constant 0 : index
    %c0_4 = arith.constant 0 : index
    %4 = vector.load %arg4[%c0_3, %c0_4] : memref<8x1xf32, #tpu.memory_space<vmem>>, vector<8x1xf32>
    %5 = vector.broadcast %4 : vector<8x1xf32> to vector<8x256xf32>
    %6 = arith.addf %3, %5 : vector<8x256xf32>
    %c0_5 = arith.constant 0 : index
    %c0_6 = arith.constant 0 : index
    %7 = vector.load %arg5[%c0_5, %c0_6] : memref<8x256xf32, #tpu.memory_space<vmem>>, vector<8x256xf32>
    tpu.vector_store %arg5[%c0_5, %c0_6], %6 {strides = array<i32>} : memref<8x256xf32, #tpu.memory_space<vmem>>, vector<8x256xf32>,
    return
  }
  func.func @transform_0(%arg0: i32, %arg1: i32) -> (i32, i32) {
    %c0_i32 = arith.constant 0 : i32
    return %arg0, %arg1 : i32, i32
  }
  func.func @transform_1(%arg0: i32, %arg1: i32) -> (i32, i32) {
    %c0_i32 = arith.constant 0 : i32
    %c0_i32_0 = arith.constant 0 : i32
    return %arg0, %c0_i32 : i32, i32
  }
  func.func @transform_2(%arg0: i32, %arg1: i32) -> (i32, i32) {
    %c0_i32 = arith.constant 0 : i32
    %c0_i32_0 = arith.constant 0 : i32
    return %arg0, %c0_i32 : i32, i32
  }
  func.func @transform_3(%arg0: i32, %arg1: i32) -> (i32, i32) {
    %c0_i32 = arith.constant 0 : i32
    return %arg0, %arg1 : i32, i32
  }
}

</mosaic_0001>

<bundles_post_ra>
// kernel: squeeze.2
= control target key start
LH: loop header
LB: loop body
LE: loop exit
PB: predicated region body
PF: predicated region fallthrough
CT: control target
= control target key end

     0   :  { %vm7_vm0 = vcmask 31744   ;;  %s39_s0 = inlined_call_operand.vmem [shape: f32[8], index: 0, kind: input, shape index: {}]   ;;  %s40_s1 = inlined_call_operand.vmem [shape: f32[2,4], index: 1, kind: output, shape index: {}]  }
   0x1   :  { %v4_v0 = vld [vmem:[%s39_s0] sm:$0x1]  ;;  %s22_s0 = smov 124  }
   0x2   :  { %5 = vst [vmem:[#allocation1] sm:$0x1] %v4_v0 }
   0x9   :  { %v9_v1 = vld [vmem:[#allocation1] sm:$0x1]  }
   0xa   :  { %v6_v2 = vld [vmem:[#allocation1] sm:$0x1]   ;;  %10 = vrot.lane.b32.xlu0 %v9_v1, %s22_s0 }
   0xb   :  { %8 = vst.msk [vmem:[#allocation0] sm:$0x1] %vm7_vm0, %v6_v2  }
  0x7c   :  { %v11_v3 = vpop.permute.xlu0 %10  }
  0x7d   :  { %14 = vst.msk [vmem:[#allocation0 + $0x1] sm:$0x1] %vm7_vm0, %v11_v3  }
  0x84   :  { %v18_v4 = vld [vmem:[#allocation0] sm:$0x3] }
  0x85   :  { %20 = vst [vmem:[%s40_s1] sm:$0x3] %v18_v4 }

// kernel: tile.18
= control target key start
LH: loop header
LB: loop body
LE: loop exit
PB: predicated region body
PF: predicated region fallthrough
CT: control target
= control target key end

     0   :  { %s22_s0 = inlined_call_operand.vmem [shape: f32[4], index: 0, kind: input, shape index: {}]   ;;  %s23_s1 = inlined_call_operand.vmem [shape: f32[2,4], index: 1, kind: output, shape index: {}]  }
   0x1   :  { %v4_v0 = vld [vmem:[%s22_s0] ss:$0 sm:$0xff] }
   0x2   :  { %5 = vst [vmem:[%s23_s1] sm:$0x3] %v4_v0 }

// kernel: tile.0
= control target key start
LH: loop header
LB: loop body
LE: loop exit
PB: predicated region body
PF: predicated region fallthrough
CT: control target
= control target key end

     0   :  { %s34_s8 = smov 125   ;;  %vm7_vm0 = vcmask 7168   ;;  %s35_s11 = smov 126   ;;  %s61_s0 = inlined_call_operand.vmem [shape: f32[2,4], index: 0, kind: input, shape index: {}]   ;;  %s62_s1 = inlined_call_operand.vmem [shape: f32[8,1], index: 1, kind: output, shape index: {}]  }
   0x1   :  { %v4_v0 = vld [vmem:[%s61_s0] sm:$0x3]  ;;  %s33_s0 = smov 127  }
   0x2   :  { %5 = vst [vmem:[#allocation0] sm:$0x3] %v4_v0 }
   0x9   :  { %v9_v1 = vld [vmem:[#allocation0] sm:$0x3]  }
   0xa   :  { %v21_v2 = vld [vmem:[#allocation0] sm:$0x3]   ;;  %10 = vrot.lane.b32.xlu0 %v9_v1, %s33_s0 }
   0xb   :  { %22 = vrot.lane.b32.xlu1 %v21_v2, %s34_s8  ;;  %v6_v3 = vld [vmem:[#allocation0] sm:$0x3]  }
   0xc   :  { %v15_v4 = vld [vmem:[#allocation0] sm:$0x3]   ;;  %8 = vst.msk [vmem:[%s62_s1] ss:$4 sm:$0x3] %vm7_vm0, %v6_v3  }
   0xe   :  { %16 = vrot.lane.b32.xlu0 %v15_v4, %s35_s11 }
  0x7c   :  { %v11_v5 = vpop.permute.xlu0 %10  }
  0x7d   :  { %v23_v6 = vpop.permute.xlu1 %22   ;;  %27 = vst.msk [vmem:[%s62_s1 + $0x1] ss:$4 sm:$0x3] %vm7_vm0, %v11_v5  }
  0x7e   :  { %29 = vst.msk [vmem:[%s62_s1 + $0x3] ss:$4 sm:$0x3] %vm7_vm0, %v23_v6  }
  0x80   :  { %v17_v7 = vpop.permute.xlu0 %16  }
  0x81   :  { %28 = vst.msk [vmem:[%s62_s1 + $0x2] ss:$4 sm:$0x3] %vm7_vm0, %v17_v7  }

// kernel: _norm_switch_forward.2
= control target key start
LH: loop header
LB: loop body
LE: loop exit
PB: predicated region body
PF: predicated region fallthrough
CT: control target
= control target key end

     0   :  { %vm14_vm0 = vcmask 7168   ;;  %v43_v2 = vmov 0.0   ;;  %s87_s0 = inlined_call_operand.vmem [shape: f32[8,256], index: 0, kind: input, shape index: {}]   ;;  %s88_s1 = inlined_call_operand.vmem [shape: f32[8,1], index: 1, kind: output, shape index: {0}]   ;;  %s89_s2 = inlined_call_operand.vmem [shape: f32[8,1], index: 2, kind: output, shape index: {1}]  }
   0x1   :  { %v17_v0 = vld [vmem:[%s87_s0] sm:$0xff]  ;;  %v18_v1 = vld [vmem:[%s87_s0 + $0x8] sm:$0xff]  ;;  %15 = vst.msk [vmem:[%s88_s1] sm:$0xff] %vm14_vm0, %v43_v2  ;;  %16 = vst.msk [vmem:[%s89_s2] sm:$0xff] %vm14_vm0, %v43_v2 }
   0x2   :  { %v20_v3 = vadd.f32 %v18_v1, %v17_v0  ;;  %v27_v4 = vmul.f32 %v17_v0, %v17_v0  ;;  %v28_v5 = vmul.f32 %v18_v1, %v18_v1 }
   0x4   :  { %21 = vadd.xlane.f32.xlu0 %v20_v3  ;;  %v29_v6 = vadd.f32 %v28_v5, %v27_v4 }
   0x8   :  { %30 = vadd.xlane.f32.xlu0 %v29_v6  ;;  %v19_v7 = vld [vmem:[%s88_s1] sm:$0xff] }
   0x9   :  { %v26_v10 = vld [vmem:[%s89_s2] sm:$0xff] }
  0x91   :  { %v22_v8 = vpop.xlane.xlu0 %21 }
  0x92   :  { %v23_v9 = vadd.f32 %v22_v8, %v19_v7 }
  0x94   :  { %25 = vst.msk [vmem:[%s88_s1] sm:$0xff] %vm14_vm0, %v23_v9 }
  0x95   :  { %v31_v11 = vpop.xlane.xlu0 %30 }
  0x96   :  { %v32_v12 = vadd.f32 %v31_v11, %v26_v10 }
  0x98   :  { %33 = vst.msk [vmem:[%s89_s2] sm:$0xff] %vm14_vm0, %v32_v12 }

// kernel: _norm_switch_forward.3
= control target key start
LH: loop header
LB: loop body
LE: loop exit
PB: predicated region body
PF: predicated region fallthrough
CT: control target
= control target key end

     0   :  { %v40_v0 = vmov 0   ;;  %s79_s1 = inlined_call_operand.vmem [shape: f32[8,1], index: 1, kind: input, shape index: {}]   ;;  %s80_s2 = inlined_call_operand.vmem [shape: f32[8,1], index: 2, kind: input, shape index: {}]   ;;  %s81_s0 = inlined_call_operand.vmem [shape: f32[8,256], index: 0, kind: input, shape index: {}]   ;;  %s82_s3 = inlined_call_operand.vmem [shape: f32[8,256], index: 3, kind: output, shape index: {}]  }
   0x1   :  { %39 = vset.pattern.permute.xlu0 %v40_v0  ;;  %v16_v1 = vld [vmem:[%s79_s1] sm:$0xff]  ;;  %v15_v5 = vld [vmem:[%s81_s0 + $0x8] sm:$0xff] }
   0x2   :  { %19 = vperm.xlu0 %39, %v16_v1   ;;  %v24_v2 = vld [vmem:[%s80_s2] sm:$0xff] }
   0x3   :  { %v14_v4 = vld [vmem:[%s81_s0] sm:$0xff] }
   0x6   :  { %27 = vperm.xlu0 %39, %v24_v2  }
  0x81   :  { %v20_v3 = vpop.permute.xlu0 %19 }
  0x82   :  { %v22_v6 = vmul.f32 %v20_v3, %v14_v4  ;;  %v23_v7 = vmul.f32 %v20_v3, %v15_v5 }
  0x85   :  { %v28_v8 = vpop.permute.xlu0 %27 }
  0x86   :  { %v30_v9 = vadd.f32 %v28_v8, %v22_v6  ;;  %v31_v10 = vadd.f32 %v28_v8, %v23_v7 }
  0x88   :  { %32 = vst [vmem:[%s82_s3] sm:$0xff] %v30_v9  ;;  %33 = vst [vmem:[%s82_s3 + $0x8] sm:$0xff] %v31_v10 }

</bundles_post_ra>
